<compile_context>
chip_gen: v6e
topology: v6e:2x2x1
jax: 0.10.0
libtpu: 0.0.40
codegen_flags: <defaults>
</compile_context>

<pallas_src>
import functools

import numpy as np
import jax
import jax.numpy as jnp
from jax import lax
from jax.experimental import pallas as pl
from jax.experimental.pallas import tpu as pltpu

LANES = 128
MAX_TILE_ROWS = 2048          # (2048, 128) f32 block = 1 MiB
_F32_INF_BITS = 0x7F800000    # int32 bit pattern of +inf (top of bisection range)

_SMEM = pl.BlockSpec(memory_space=pltpu.MemorySpace.SMEM)
_PARALLEL = pltpu.CompilerParams(dimension_semantics=("parallel",))


def _softplus_neg(y):
    # softplus(-y) = max(-y, 0) + log(1 + exp(-|y|)); exactly 2 transcendentals.
    return jnp.maximum(-y, 0.0) + jnp.log(1.0 + jnp.exp(-jnp.abs(y)))


# ----------------------------- Pallas kernels ------------------------------

def _loss_mul_kernel(y_ref, t_ref, lm_ref, *, n, n_pad):
    y = y_ref[...]
    t = t_ref[...]
    # BCE-with-logits (no pos_weight) * target; clamp >= 0 so the float bit
    # pattern is a monotone sort key for the bisection threshold search.
    lm = jnp.maximum(((1.0 - t) * y + _softplus_neg(y)) * t, 0.0)
    if n < n_pad:  # poison the ragged tail so it never enters the selection
        tr, _ = y.shape
        base = pl.program_id(0) * (tr * LANES)
        row = lax.broadcasted_iota(jnp.int32, (tr, LANES), 0)
        lane = lax.broadcasted_iota(jnp.int32, (tr, LANES), 1)
        flat = base + row * LANES + lane
        lm = jnp.where(flat >= n, jnp.float32(jnp.inf), lm)
    lm_ref[...] = lm


def _count_le_kernel(pivot_ref, lm_ref, out_ref):
    # per-lane partial counts of loss_mul <= pivot, placed in row 0 of an
    # (8, 128) lane-dense output block (summed in JAX).
    pivot = pivot_ref[0, 0]
    cnt = jnp.sum((lm_ref[...] <= pivot).astype(jnp.int32), axis=0, keepdims=True)
    row8 = lax.broadcasted_iota(jnp.int32, (8, LANES), 0)
    out_ref[...] = jnp.where(row8 == 0, cnt, 0)


def _selected_bce_kernel(pw_ref, thr_ref, cut_ref, y_ref, t_ref, lm_ref, out_ref):
    pw = pw_ref[0, 0]
    thr = thr_ref[0, 0]
    cut = cut_ref[0, 0]
    y = y_ref[...]
    t = t_ref[...]
    lm = lm_ref[...]
    tr, _ = y.shape
    # stable-argsort-equivalent selection: loss_mul < thr, plus the first
    # `need` ties (flat row-major index < cut).  Padded elements are +inf.
    base = pl.program_id(0) * (tr * LANES)
    row = lax.broadcasted_iota(jnp.int32, (tr, LANES), 0)
    lane = lax.broadcasted_iota(jnp.int32, (tr, LANES), 1)
    flat = base + row * LANES + lane
    sel = (lm < thr) | ((lm == thr) & (flat < cut))
    # PyTorch BCE-with-logits with pos_weight p:
    #   (1 - t) * y + (1 + (p - 1) * t) * softplus(-y)
    loss = (1.0 - t) * y + (1.0 + (pw - 1.0) * t) * _softplus_neg(y)
    part = jnp.sum(jnp.where(sel, loss, 0.0), axis=0, keepdims=True)   # (1, 128)
    row8 = lax.broadcasted_iota(jnp.int32, (8, LANES), 0)
    out_ref[...] = jnp.where(row8 == 0, part, 0.0)


# ----------------------------- Pallas wrappers ------------------------------

def _cdiv(a, b):
    return -(-a // b)


def _tile_geometry(n):
    rows = _cdiv(n, LANES)
    # >= 2 tiles whenever there is enough work so the "parallel" grid axis can
    # feed both v7x TensorCores; tile_rows re-derived from n_tiles to avoid
    # near-2x padding waste for unlucky sizes.
    min_tiles = 2 if rows >= 16 else 1
    n_tiles = max(_cdiv(rows, MAX_TILE_ROWS), min_tiles)
    tile_rows = max(8, 8 * _cdiv(_cdiv(rows, n_tiles), 8))
    n_tiles = _cdiv(rows, tile_rows)
    return tile_rows, n_tiles


def _blocked(tile_rows):
    return pl.BlockSpec((tile_rows, LANES), lambda i: (i, 0))


def _compute_loss_mul(y2d, t2d, n, tile_rows, n_tiles):
    rows_pad = n_tiles * tile_rows
    kern = functools.partial(_loss_mul_kernel, n=n, n_pad=rows_pad * LANES)
    return pl.pallas_call(
        kern,
        out_shape=jax.ShapeDtypeStruct((rows_pad, LANES), jnp.float32),
        grid=(n_tiles,),
        in_specs=[_blocked(tile_rows), _blocked(tile_rows)],
        out_specs=_blocked(tile_rows),
        compiler_params=_PARALLEL,
    )(y2d, t2d)


def _count_le(pivot, lm2d, tile_rows, n_tiles):
    parts = pl.pallas_call(
        _count_le_kernel,
        out_shape=jax.ShapeDtypeStruct((n_tiles * 8, LANES), jnp.int32),
        grid=(n_tiles,),
        in_specs=[_SMEM, _blocked(tile_rows)],
        out_specs=pl.BlockSpec((8, LANES), lambda i: (i, 0)),
        compiler_params=_PARALLEL,
    )(pivot, lm2d)
    return jnp.sum(parts)


def _selected_bce_partials(pw, thr, cut, y2d, t2d, lm2d, tile_rows, n_tiles):
    return pl.pallas_call(
        _selected_bce_kernel,
        out_shape=jax.ShapeDtypeStruct((n_tiles * 8, LANES), jnp.float32),
        grid=(n_tiles,),
        in_specs=[_SMEM, _SMEM, _SMEM,
                  _blocked(tile_rows), _blocked(tile_rows), _blocked(tile_rows)],
        out_specs=pl.BlockSpec((8, LANES), lambda i: (i, 0)),
        compiler_params=_PARALLEL,
    )(pw, thr, cut, y2d, t2d, lm2d)


@functools.partial(jax.jit, static_argnames=("n", "tile_rows", "n_tiles"))
def _tce_core(y, t, num_remember, pos_weight, *, n, tile_rows, n_tiles):
    rows_pad = n_tiles * tile_rows
    n_pad = rows_pad * LANES
    y2d = jnp.pad(y, (0, n_pad - n)).reshape(rows_pad, LANES)
    t2d = jnp.pad(t, (0, n_pad - n)).reshape(rows_pad, LANES)

    # ---- kernel 1: per-element loss * t, padded tail poisoned to +inf -------
    lm2d = _compute_loss_mul(y2d, t2d, n, tile_rows, n_tiles)

    # ---- threshold = num_remember-th smallest loss_mul, via bisection -------
    # Each probe is one HBM-bound Pallas count pass; no sort, no top_k, and
    # num_remember stays a traced value (no recompiles across schedule steps).
    k = num_remember.astype(jnp.int32)

    def probe(key_i32):
        pivot = lax.bitcast_convert_type(key_i32, jnp.float32).reshape(1, 1)
        return _count_le(pivot, lm2d, tile_rows, n_tiles)

    def body(_, carry):
        lo, hi, cnt_lo, cnt_hi = carry
        mid = lo + (hi - lo) // 2
        cnt = probe(mid)
        ge = cnt >= k
        return (jnp.where(ge, lo, mid), jnp.where(ge, mid, hi),
                jnp.where(ge, cnt_lo, cnt), jnp.where(ge, cnt, cnt_hi))

    init = (jnp.int32(-1), jnp.int32(_F32_INF_BITS), jnp.int32(0), jnp.int32(n_pad))
    lo, hi, cnt_lo, cnt_hi = lax.fori_loop(0, 32, body, init)

    thr = lax.bitcast_convert_type(hi, jnp.float32)   # exact k-th smallest value
    need = k - cnt_lo                                  # ties still to select (>=1)
    count_eq = cnt_hi - cnt_lo

    # TODO(synk): the rare duplicated-threshold tie-break uses a plain-JAX
    # cumsum/argmax (stable flat-index order); no clean single-pass Pallas
    # equivalent.  The common (unique-threshold) case skips it via lax.cond.
    def _tie_cut():
        eq = (lm2d == thr).reshape(-1).astype(jnp.int32)
        pos = jnp.argmax(jnp.cumsum(eq) >= need)
        return (pos + 1).astype(jnp.int32)

    idx_cut = lax.cond(need >= count_eq, lambda: jnp.int32(n_pad), _tie_cut)

    # ---- kernel 2: pos-weighted BCE over selected elements (lane partials) --
    pw2 = pos_weight.astype(jnp.float32).reshape(1, 1)
    thr2 = thr.reshape(1, 1)
    cut2 = idx_cut.reshape(1, 1)
    parts = _selected_bce_partials(pw2, thr2, cut2, y2d, t2d, lm2d,
                                   tile_rows, n_tiles)
    return jnp.sum(parts) / k.astype(jnp.float32)


def tce_loss_pallas(y, t, drop_rate, pos_weight=None):
    y = jnp.asarray(y, jnp.float32).reshape(-1)
    t = jnp.asarray(t, jnp.float32).reshape(-1)
    n = int(y.shape[0])
    tile_rows, n_tiles = _tile_geometry(n)
    # matches int(remember_rate * len) in the reference; guarded >= 1
    num_remember = max(int((1.0 - float(drop_rate)) * n), 1)
    pw = 1.0 if pos_weight is None else float(pos_weight)
    return _tce_core(y, t, jnp.int32(num_remember), jnp.float32(pw),
                     n=n, tile_rows=tile_rows, n_tiles=n_tiles)


class TCELoss:
    """JAX/Pallas port of TCE_Loss."""

    def __init__(self, num_iterations, drop_rate=0.2, exponent=1):
        self.num_iterations = num_iterations
        self.drop_rate = drop_rate
        self.exponent = exponent
        self.drop_rate_ls = np.linspace(0, self.drop_rate ** self.exponent,
                                        self.num_iterations)

    def drop_rate_schedule(self, iteration):
        if iteration < self.num_iterations:
            return float(self.drop_rate_ls[iteration])
        return self.drop_rate

    def __call__(self, y, t, n_iterations, pos_weight=None):
        drop_rate = self.drop_rate_schedule(n_iterations)
        return tce_loss_pallas(y, t, drop_rate, pos_weight)


# ------------------------------- reference ---------------------------------

def _tce_loss_ref(y, t, drop_rate, pos_weight):
    y = jnp.asarray(y, jnp.float32).reshape(-1)
    t = jnp.asarray(t, jnp.float32).reshape(-1)
    sp = jnp.maximum(-y, 0.0) + jnp.log(1.0 + jnp.exp(-jnp.abs(y)))
    lm = ((1.0 - t) * y + sp) * t
    n = y.shape[0]
    num_remember = max(int((1.0 - drop_rate) * n), 1)
    sel = jnp.argsort(lm)[:num_remember]          # stable sort -> index-order ties
    ys, ts = y[sel], t[sel]
    sps = jnp.maximum(-ys, 0.0) + jnp.log(1.0 + jnp.exp(-jnp.abs(ys)))
    lsel = (1.0 - ts) * ys + (1.0 + (pos_weight - 1.0) * ts) * sps
    return jnp.mean(lsel)


if __name__ == "__main__":
    key = jax.random.PRNGKey(0)
    keys = jax.random.split(key, 6)

    loss_mod = TCELoss(num_iterations=10, drop_rate=0.2, exponent=1)
    pos_weight = 2.0
    n_iterations = 5
    drop_rate = loss_mod.drop_rate_schedule(n_iterations)

    def check(y, t, label):
        out = jax.block_until_ready(
            loss_mod(y, t, n_iterations, pos_weight=pos_weight))
        ref = _tce_loss_ref(y, t, drop_rate, pos_weight)
        assert np.isclose(float(out), float(ref), rtol=1e-5, atol=1e-5), (
            label, float(out), float(ref))

    # case 1: lane-aligned length, single tile
    N1 = 1024
    y1 = jax.random.normal(keys[0], (N1,), dtype=jnp.float32) * 3.0
    t1 = (jax.random.uniform(keys[1], (N1,)) < 0.3).astype(jnp.float32)
    check(y1, t1, "aligned")

    # case 2: ragged length (exercises in-kernel +inf poisoning of the tail)
    N2 = 1000
    y2 = jax.random.normal(keys[2], (N2,), dtype=jnp.float32) * 3.0
    t2 = (jax.random.uniform(keys[3], (N2,)) < 0.3).astype(jnp.float32)
    check(y2, t2, "ragged")

    # case 3: multi-tile + many ties at threshold 0 (rare tie-break path)
    N3 = 4100
    y3 = jax.random.normal(keys[4], (N3,), dtype=jnp.float32) * 3.0
    t3 = (jax.random.uniform(keys[5], (N3,)) < 0.05).astype(jnp.float32)
    check(y3, t3, "ties")

    print("KERNEL_OK")
</pallas_src>

<mosaic_0001>
module attributes {stable_mosaic.version = 11 : i64} {
  func.func @_count_le_kernel(%arg0: i32, %arg1: memref<1x1xf32, #tpu.memory_space<smem>>, %arg2: memref<8x128xf32, #tpu.memory_space<vmem>>, %arg3: memref<8x128xi32, #tpu.memory_space<vmem>>) attributes {dimension_semantics = [#tpu.dimension_semantics<parallel>], iteration_bounds = array<i64: 1>, scalar_prefetch = 0 : i64, scratch_operands = 0 : i64, tpu.core_type = #tpu.core_type<tc>, window_params = [{transform_indices = @transform_0, window_bounds = array<i64: 1, 1>}, {transform_indices = @transform_1, window_bounds = array<i64: 8, 128>}, {transform_indices = @transform_2, window_bounds = array<i64: 8, 128>}]} {
    %c0 = arith.constant 0 : index
    %c0_0 = arith.constant 0 : index
    %0 = memref.load %arg1[%c0, %c0_0] : memref<1x1xf32, #tpu.memory_space<smem>>
    %c0_1 = arith.constant 0 : index
    %c0_2 = arith.constant 0 : index
    %1 = vector.load %arg2[%c0_1, %c0_2] : memref<8x128xf32, #tpu.memory_space<vmem>>, vector<8x128xf32>
    %2 = vector.broadcast %0 : f32 to vector<8x128xf32>
    %3 = arith.cmpf ole, %1, %2 : vector<8x128xf32>
    %4 = arith.extui %3 : vector<8x128xi1> to vector<8x128xi32>
    %cst = arith.constant dense<0> : vector<128xi32>
    %5 = vector.multi_reduction <add>, %4, %cst [0] : vector<8x128xi32> to vector<128xi32>
    %6 = vector.shape_cast %5 : vector<128xi32> to vector<1x128xi32>
    %7 = tpu.iota {dimensions = array<i32: 0>} : vector<8x128xi32>
    %c0_i32 = arith.constant 0 : i32
    %8 = vector.broadcast %c0_i32 : i32 to vector<8x128xi32>
    %9 = arith.cmpi eq, %7, %8 : vector<8x128xi32>
    %c0_i32_3 = arith.constant 0 : i32
    %10 = vector.shape_cast %6 : vector<1x128xi32> to vector<1x128xi32>
    %11 = vector.broadcast %10 : vector<1x128xi32> to vector<8x128xi32>
    %12 = vector.broadcast %c0_i32_3 : i32 to vector<8x128xi32>
    %13 = arith.select %9, %11, %12 : vector<8x128xi1>, vector<8x128xi32>
    %c0_4 = arith.constant 0 : index
    %c0_5 = arith.constant 0 : index
    %14 = vector.load %arg3[%c0_4, %c0_5] : memref<8x128xi32, #tpu.memory_space<vmem>>, vector<8x128xi32>
    tpu.vector_store %arg3[%c0_4, %c0_5], %13 {strides = array<i32>} : memref<8x128xi32, #tpu.memory_space<vmem>>, vector<8x128xi32>,
    return
  }
  func.func @transform_0(%arg0: i32) -> (i32, i32) {
    %c0_i32 = arith.constant 0 : i32
    %c0_i32_0 = arith.constant 0 : i32
    %c0_i32_1 = arith.constant 0 : i32
    return %c0_i32, %c0_i32_0 : i32, i32
  }
  func.func @transform_1(%arg0: i32) -> (i32, i32) {
    %c0_i32 = arith.constant 0 : i32
    %c0_i32_0 = arith.constant 0 : i32
    return %arg0, %c0_i32 : i32, i32
  }
  func.func @transform_2(%arg0: i32) -> (i32, i32) {
    %c0_i32 = arith.constant 0 : i32
    %c0_i32_0 = arith.constant 0 : i32
    return %arg0, %c0_i32 : i32, i32
  }
}

module attributes {stable_mosaic.version = 11 : i64} {
  func.func @_loss_mul_kernel(%arg0: i32, %arg1: memref<8x128xf32, #tpu.memory_space<vmem>>, %arg2: memref<8x128xf32, #tpu.memory_space<vmem>>, %arg3: memref<8x128xf32, #tpu.memory_space<vmem>>) attributes {dimension_semantics = [#tpu.dimension_semantics<parallel>], iteration_bounds = array<i64: 1>, scalar_prefetch = 0 : i64, scratch_operands = 0 : i64, tpu.core_type = #tpu.core_type<tc>, window_params = [{transform_indices = @transform_0, window_bounds = array<i64: 8, 128>}, {transform_indices = @transform_1, window_bounds = array<i64: 8, 128>}, {transform_indices = @transform_2, window_bounds = array<i64: 8, 128>}]} {
    %c0 = arith.constant 0 : index
    %c0_0 = arith.constant 0 : index
    %0 = vector.load %arg1[%c0, %c0_0] : memref<8x128xf32, #tpu.memory_space<vmem>>, vector<8x128xf32>
    %c0_1 = arith.constant 0 : index
    %c0_2 = arith.constant 0 : index
    %1 = vector.load %arg2[%c0_1, %c0_2] : memref<8x128xf32, #tpu.memory_space<vmem>>, vector<8x128xf32>
    %cst = arith.constant 1.000000e+00 : f32
    %2 = vector.broadcast %cst : f32 to vector<8x128xf32>
    %3 = arith.subf %2, %1 : vector<8x128xf32>
    %4 = arith.mulf %3, %0 : vector<8x128xf32>
    %cst_3 = arith.constant 0.000000e+00 : f32
    %5 = vector.broadcast %cst_3 : f32 to vector<8x128xf32>
    %6 = arith.subf %5, %0 : vector<8x128xf32>
    %cst_4 = arith.constant 0.000000e+00 : f32
    %7 = vector.broadcast %cst_4 : f32 to vector<8x128xf32>
    %8 = arith.maximumf %6, %7 : vector<8x128xf32>
    %9 = math.absf %0 : vector<8x128xf32>
    %cst_5 = arith.constant 0.000000e+00 : f32
    %10 = vector.broadcast %cst_5 : f32 to vector<8x128xf32>
    %11 = arith.subf %10, %9 : vector<8x128xf32>
    %12 = math.exp %11 : vector<8x128xf32>
    %cst_6 = arith.constant 1.000000e+00 : f32
    %13 = vector.broadcast %cst_6 : f32 to vector<8x128xf32>
    %14 = arith.addf %13, %12 : vector<8x128xf32>
    %15 = math.log %14 : vector<8x128xf32>
    %16 = arith.addf %8, %15 : vector<8x128xf32>
    %17 = arith.addf %4, %16 : vector<8x128xf32>
    %18 = arith.mulf %17, %1 : vector<8x128xf32>
    %cst_7 = arith.constant 0.000000e+00 : f32
    %19 = vector.broadcast %cst_7 : f32 to vector<8x128xf32>
    %20 = arith.maximumf %18, %19 : vector<8x128xf32>
    %c0_8 = arith.constant 0 : index
    %c0_9 = arith.constant 0 : index
    %21 = vector.load %arg3[%c0_8, %c0_9] : memref<8x128xf32, #tpu.memory_space<vmem>>, vector<8x128xf32>
    tpu.vector_store %arg3[%c0_8, %c0_9], %20 {strides = array<i32>} : memref<8x128xf32, #tpu.memory_space<vmem>>, vector<8x128xf32>,
    return
  }
  func.func @transform_0(%arg0: i32) -> (i32, i32) {
    %c0_i32 = arith.constant 0 : i32
    %c0_i32_0 = arith.constant 0 : i32
    return %arg0, %c0_i32 : i32, i32
  }
  func.func @transform_1(%arg0: i32) -> (i32, i32) {
    %c0_i32 = arith.constant 0 : i32
    %c0_i32_0 = arith.constant 0 : i32
    return %arg0, %c0_i32 : i32, i32
  }
  func.func @transform_2(%arg0: i32) -> (i32, i32) {
    %c0_i32 = arith.constant 0 : i32
    %c0_i32_0 = arith.constant 0 : i32
    return %arg0, %c0_i32 : i32, i32
  }
}

module attributes {stable_mosaic.version = 11 : i64} {
  func.func @_selected_bce_kernel(%arg0: i32, %arg1: memref<1x1xf32, #tpu.memory_space<smem>>, %arg2: memref<1x1xf32, #tpu.memory_space<smem>>, %arg3: memref<1x1xi32, #tpu.memory_space<smem>>, %arg4: memref<8x128xf32, #tpu.memory_space<vmem>>, %arg5: memref<8x128xf32, #tpu.memory_space<vmem>>, %arg6: memref<8x128xf32, #tpu.memory_space<vmem>>, %arg7: memref<8x128xf32, #tpu.memory_space<vmem>>) attributes {dimension_semantics = [#tpu.dimension_semantics<parallel>], iteration_bounds = array<i64: 1>, scalar_prefetch = 0 : i64, scratch_operands = 0 : i64, tpu.core_type = #tpu.core_type<tc>, window_params = [{transform_indices = @transform_0, window_bounds = array<i64: 1, 1>}, {transform_indices = @transform_1, window_bounds = array<i64: 1, 1>}, {transform_indices = @transform_2, window_bounds = array<i64: 1, 1>}, {transform_indices = @transform_3, window_bounds = array<i64: 8, 128>}, {transform_indices = @transform_4, window_bounds = array<i64: 8, 128>}, {transform_indices = @transform_5, window_bounds = array<i64: 8, 128>}, {transform_indices = @transform_6, window_bounds = array<i64: 8, 128>}]} {
    %c0 = arith.constant 0 : index
    %c0_0 = arith.constant 0 : index
    %0 = memref.load %arg1[%c0, %c0_0] : memref<1x1xf32, #tpu.memory_space<smem>>
    %c0_1 = arith.constant 0 : index
    %c0_2 = arith.constant 0 : index
    %1 = memref.load %arg2[%c0_1, %c0_2] : memref<1x1xf32, #tpu.memory_space<smem>>
    %c0_3 = arith.constant 0 : index
    %c0_4 = arith.constant 0 : index
    %2 = memref.load %arg3[%c0_3, %c0_4] : memref<1x1xi32, #tpu.memory_space<smem>>
    %c0_5 = arith.constant 0 : index
    %c0_6 = arith.constant 0 : index
    %3 = vector.load %arg4[%c0_5, %c0_6] : memref<8x128xf32, #tpu.memory_space<vmem>>, vector<8x128xf32>
    %c0_7 = arith.constant 0 : index
    %c0_8 = arith.constant 0 : index
    %4 = vector.load %arg5[%c0_7, %c0_8] : memref<8x128xf32, #tpu.memory_space<vmem>>, vector<8x128xf32>
    %c0_9 = arith.constant 0 : index
    %c0_10 = arith.constant 0 : index
    %5 = vector.load %arg6[%c0_9, %c0_10] : memref<8x128xf32, #tpu.memory_space<vmem>>, vector<8x128xf32>
    %c1024_i32 = arith.constant 1024 : i32
    %6 = arith.muli %arg0, %c1024_i32 : i32
    %7 = tpu.iota {dimensions = array<i32: 0>} : vector<8x128xi32>
    %8 = tpu.iota {dimensions = array<i32: 1>} : vector<8x128xi32>
    %c128_i32 = arith.constant 128 : i32
    %9 = vector.broadcast %c128_i32 : i32 to vector<8x128xi32>
    %10 = arith.muli %7, %9 : vector<8x128xi32>
    %11 = vector.broadcast %6 : i32 to vector<8x128xi32>
    %12 = arith.addi %11, %10 : vector<8x128xi32>
    %13 = arith.addi %12, %8 : vector<8x128xi32>
    %14 = vector.broadcast %1 : f32 to vector<8x128xf32>
    %15 = arith.cmpf olt, %5, %14 : vector<8x128xf32>
    %16 = vector.broadcast %1 : f32 to vector<8x128xf32>
    %17 = arith.cmpf oeq, %5, %16 : vector<8x128xf32>
    %18 = vector.broadcast %2 : i32 to vector<8x128xi32>
    %19 = arith.cmpi slt, %13, %18 : vector<8x128xi32>
    %20 = arith.andi %17, %19 : vector<8x128xi1>
    %21 = arith.ori %15, %20 : vector<8x128xi1>
    %cst = arith.constant 1.000000e+00 : f32
    %22 = vector.broadcast %cst : f32 to vector<8x128xf32>
    %23 = arith.subf %22, %4 : vector<8x128xf32>
    %24 = arith.mulf %23, %3 : vector<8x128xf32>
    %cst_11 = arith.constant 1.000000e+00 : f32
    %25 = arith.subf %0, %cst_11 : f32
    %26 = vector.broadcast %25 : f32 to vector<8x128xf32>
    %27 = arith.mulf %26, %4 : vector<8x128xf32>
    %cst_12 = arith.constant 1.000000e+00 : f32
    %28 = vector.broadcast %cst_12 : f32 to vector<8x128xf32>
    %29 = arith.addf %28, %27 : vector<8x128xf32>
    %cst_13 = arith.constant 0.000000e+00 : f32
    %30 = vector.broadcast %cst_13 : f32 to vector<8x128xf32>
    %31 = arith.subf %30, %3 : vector<8x128xf32>
    %cst_14 = arith.constant 0.000000e+00 : f32
    %32 = vector.broadcast %cst_14 : f32 to vector<8x128xf32>
    %33 = arith.maximumf %31, %32 : vector<8x128xf32>
    %34 = math.absf %3 : vector<8x128xf32>
    %cst_15 = arith.constant 0.000000e+00 : f32
    %35 = vector.broadcast %cst_15 : f32 to vector<8x128xf32>
    %36 = arith.subf %35, %34 : vector<8x128xf32>
    %37 = math.exp %36 : vector<8x128xf32>
    %cst_16 = arith.constant 1.000000e+00 : f32
    %38 = vector.broadcast %cst_16 : f32 to vector<8x128xf32>
    %39 = arith.addf %38, %37 : vector<8x128xf32>
    %40 = math.log %39 : vector<8x128xf32>
    %41 = arith.addf %33, %40 : vector<8x128xf32>
    %42 = arith.mulf %29, %41 : vector<8x128xf32>
    %43 = arith.addf %24, %42 : vector<8x128xf32>
    %cst_17 = arith.constant 0.000000e+00 : f32
    %44 = vector.broadcast %cst_17 : f32 to vector<8x128xf32>
    %45 = arith.select %21, %43, %44 : vector<8x128xi1>, vector<8x128xf32>
    %cst_18 = arith.constant dense<0.000000e+00> : vector<128xf32>
    %46 = vector.multi_reduction <add>, %45, %cst_18 [0] : vector<8x128xf32> to vector<128xf32>
    %47 = vector.shape_cast %46 : vector<128xf32> to vector<1x128xf32>
    %48 = tpu.iota {dimensions = array<i32: 0>} : vector<8x128xi32>
    %c0_i32 = arith.constant 0 : i32
    %49 = vector.broadcast %c0_i32 : i32 to vector<8x128xi32>
    %50 = arith.cmpi eq, %48, %49 : vector<8x128xi32>
    %cst_19 = arith.constant 0.000000e+00 : f32
    %51 = vector.shape_cast %47 : vector<1x128xf32> to vector<1x128xf32>
    %52 = vector.broadcast %51 : vector<1x128xf32> to vector<8x128xf32>
    %53 = vector.broadcast %cst_19 : f32 to vector<8x128xf32>
    %54 = arith.select %50, %52, %53 : vector<8x128xi1>, vector<8x128xf32>
    %c0_20 = arith.constant 0 : index
    %c0_21 = arith.constant 0 : index
    %55 = vector.load %arg7[%c0_20, %c0_21] : memref<8x128xf32, #tpu.memory_space<vmem>>, vector<8x128xf32>
    tpu.vector_store %arg7[%c0_20, %c0_21], %54 {strides = array<i32>} : memref<8x128xf32, #tpu.memory_space<vmem>>, vector<8x128xf32>,
    return
  }
  func.func @transform_0(%arg0: i32) -> (i32, i32) {
    %c0_i32 = arith.constant 0 : i32
    %c0_i32_0 = arith.constant 0 : i32
    %c0_i32_1 = arith.constant 0 : i32
    return %c0_i32, %c0_i32_0 : i32, i32
  }
  func.func @transform_1(%arg0: i32) -> (i32, i32) {
    %c0_i32 = arith.constant 0 : i32
    %c0_i32_0 = arith.constant 0 : i32
    %c0_i32_1 = arith.constant 0 : i32
    return %c0_i32, %c0_i32_0 : i32, i32
  }
  func.func @transform_2(%arg0: i32) -> (i32, i32) {
    %c0_i32 = arith.constant 0 : i32
    %c0_i32_0 = arith.constant 0 : i32
    %c0_i32_1 = arith.constant 0 : i32
    return %c0_i32, %c0_i32_0 : i32, i32
  }
  func.func @transform_3(%arg0: i32) -> (i32, i32) {
    %c0_i32 = arith.constant 0 : i32
    %c0_i32_0 = arith.constant 0 : i32
    return %arg0, %c0_i32 : i32, i32
  }
  func.func @transform_4(%arg0: i32) -> (i32, i32) {
    %c0_i32 = arith.constant 0 : i32
    %c0_i32_0 = arith.constant 0 : i32
    return %arg0, %c0_i32 : i32, i32
  }
  func.func @transform_5(%arg0: i32) -> (i32, i32) {
    %c0_i32 = arith.constant 0 : i32
    %c0_i32_0 = arith.constant 0 : i32
    return %arg0, %c0_i32 : i32, i32
  }
  func.func @transform_6(%arg0: i32) -> (i32, i32) {
    %c0_i32 = arith.constant 0 : i32
    %c0_i32_0 = arith.constant 0 : i32
    return %arg0, %c0_i32 : i32, i32
  }
}

</mosaic_0001>

<bundles_post_ra>
// kernel: closed_call.11
= control target key start
LH: loop header
LB: loop body
LE: loop exit
PB: predicated region body
PF: predicated region fallthrough
CT: control target
= control target key end

     0   :  { %v33_v2 = vmov 0   ;;  %v23_v5 = vlaneseq  ;;  %s58_s0 = inlined_call_operand.<no memory space> [shape: f32[1,1], index: 0, kind: input, shape index: {}]   ;;  %s59_s1 = inlined_call_operand.vmem [shape: f32[8,128], index: 1, kind: input, shape index: {}]   ;;  %s60_s2 = inlined_call_operand.vmem [shape: s32[8,128], index: 2, kind: output, shape index: {}]  }
   0x1   :  { %v13_v0 = vld [vmem:[%s59_s1] sm:$0xff]  ;;  %v14_v1 = vstv %s58_s0 }
   0x2   :  { %vm15_vm0 = vcmp.le.f32.partialorder %v13_v0, %v14_v1  ;;  %v24_v8 = vshrl.u32 %v23_v5, 7 }
   0x3   :  { %v16_v3 = vsel %vm15_vm0, 1, %v33_v2 }
   0x4   :  { %v17_v4 = vrot.slane %v16_v3, 4  ;;  %vm25_vm1 = vcmp.eq.s32.totalorder %v24_v8, 0 }
   0x6   :  { %v18_v6 = vadd.s32 %v17_v4, %v16_v3 }
   0x8   :  { %v19_v7 = vrot.slane %v18_v6, 2 }
   0xa   :  { %v20_v9 = vadd.s32 %v19_v7, %v18_v6 }
   0xc   :  { %v21_v10 = vrot.slane %v20_v9, 1 }
   0xe   :  { %v22_v11 = vadd.s32 %v21_v10, %v20_v9 }
  0x10   :  { %v26_v12 = vsel %vm25_vm1, %v22_v11, 0 }
  0x11   :  { %27 = vst [vmem:[%s60_s2] sm:$0xff] %v26_v12 }

// kernel: _tce_core.2
= control target key start
LH: loop header
LB: loop body
LE: loop exit
PB: predicated region body
PF: predicated region fallthrough
CT: control target
= control target key end

     0   :  { %7 = vsyncpa [#allocation3], 0  ;;  %s135_s0 = inlined_call_operand.hbm [shape: f32[8,128], index: 0, kind: input, shape index: {}]   ;;  %s136_s1 = inlined_call_operand.hbm [shape: f32[8,128], index: 1, kind: input, shape index: {}]   ;;  %s137_s2 = inlined_call_operand.vmem [shape: f32[8,128], index: 2, kind: output, shape index: {}]  }
   0x1   :  { %8 = vsyncpa [#allocation5], 0  ;;  %s109_s9 = smov [#allocation2]   ;;  %s110_s11 = smov [#allocation4]  }
   0x2   :  { %s15_s10 = sshll.u32 %s109_s9, 4  ;;  %s25_s12 = sshll.u32 %s110_s11, 4  ;;  %s16_s10 = int_to_ptr.vmem [resolvable:$true] %s15_s10  ;;  %s26_s12 = int_to_ptr.vmem [resolvable:$true] %s25_s12 }
   0x3   :  { %s73_s13 = scalar_lea.vmem %s16_s10, 128  ;;  %p78_p1 = scmp.lt.s32.totalorder %s16_s10, %s16_s10 }
   0x4   :  { %p74_p0 = scmp.ne.s32.totalorder %s16_s10, %s73_s13  ;;  %p79_p2 = scmp.lt.s32.totalorder %s73_s13, %s73_s13 }
   0x6   :  { %p80_p3 = por %p79_p2, %p78_p1 }
   0x8   :  { %p81_p4 = pnand %p80_p3, %p74_p0 }
   0xa   :  { %84 = shalt.err (!%p81_p4)
}
   0xb   :  { %18 = dma.hbm_to_vmem [thread:$0]  %s135_s0, 128, %s16_s10, [#allocation3]  }
   0xc   :  { %s93_s16 = scalar_lea.vmem %s26_s12, 128  ;;  %p98_p6 = scmp.lt.s32.totalorder %s26_s12, %s26_s12 }
   0xd   :  { %p94_p5 = scmp.ne.s32.totalorder %s26_s12, %s93_s16  ;;  %p99_p7 = scmp.lt.s32.totalorder %s93_s16, %s93_s16 }
   0xf   :  { %p100_p8 = por %p99_p7, %p98_p6 }
  0x11   :  { %p101_p9 = pnand %p100_p8, %p94_p5 }
  0x13   :  { %104 = shalt.err (!%p101_p9)
}
  0x14   :  { %28 = dma.hbm_to_vmem [thread:$0]  %s136_s1, 128, %s26_s12, [#allocation5]  }
  0x15   :  { %105 = dma.done.wait [#allocation3], 128  }
  0x16   :  { %106 = vsyncadd [#allocation3], 4294967168 }
  0x17   :  { %107 = dma.done.wait [#allocation5], 128  }
  0x18   :  { %108 = vsyncadd [#allocation5], 4294967168  ;;  %v35_v0 = vld [vmem:[#allocation2] sm:$0xff]  ;;  %v36_v6 = vld [vmem:[#allocation4] sm:$0xff] }
  0x19   :  { %v41_v1 = vand.u32 2147483647, %v35_v0  ;;  %v39_v7 = vsub.f32 0.0, %v35_v0  ;;  %v37_v8 = vsub.f32 1.0, %v36_v6 }
  0x1b   :  { %v42_v2 = vsub.f32 0.0, %v41_v1  ;;  %v40_v9 = vmax.f32 %v39_v7, 0.0  ;;  %v38_v11 = vmul.f32 %v37_v8, %v35_v0 }
  0x1d   :  { %v43_v3 = vmul.f32 1.442695, %v42_v2 }
  0x1f   :  { %61 = vpow2.f32 %v43_v3 }
  0x2c   :  { %v62_v4 = vpop.eup %61 }
  0x2d   :  { %v45_v5 = vadd.f32 1.0, %v62_v4 }
  0x2f   :  { %63 = vlog2.f32 %v45_v5 }
  0x3c   :  { %v64_v10 = vpop.eup %63 }
  0x3d   :  { %v47_v12 = vmul.f32 0.6931472, %v64_v10 }
  0x3f   :  { %v48_v13 = vadd.f32 %v47_v12, %v40_v9 }
  0x41   :  { %v49_v14 = vadd.f32 %v48_v13, %v38_v11 }
  0x43   :  { %v50_v15 = vmul.f32 %v49_v14, %v36_v6 }
  0x45   :  { %v51_v16 = vmax.f32 %v50_v15, 0.0 }
  0x47   :  { %52 = vst [vmem:[%s137_s2] sm:$0xff] %v51_v16 }
  0x48   :  { %57 = vsyncpa [#allocation3], 1 }
  0x49   :  { %58 = vsyncpa [#allocation5], 1 }

// kernel: _tce_core.3
= control target key start
LH: loop header
LB: loop body
LE: loop exit
PB: predicated region body
PF: predicated region fallthrough
CT: control target
= control target key end

     0   :  { %14 = vsyncpa [#allocation6], 0  ;;  %s121_s21 = smov [#allocation5]   ;;  %s178_s0 = inlined_call_operand.<no memory space> [shape: f32[1,1], index: 0, kind: input, shape index: {}]   ;;  %s179_s1 = inlined_call_operand.<no memory space> [shape: f32[1,1], index: 1, kind: input, shape index: {}]   ;;  %s180_s2 = inlined_call_operand.<no memory space> [shape: s32[1,1], index: 2, kind: input, shape index: {}]   ;;  %s181_s3 = inlined_call_operand.vmem [shape: f32[8,128], index: 3, kind: input, shape index: {}]   ;;  %s182_s4 = inlined_call_operand.vmem [shape: f32[8,128], index: 4, kind: input, shape index: {}]   ;;  %s183_s5 = inlined_call_operand.hbm [shape: f32[8,128], index: 5, kind: input, shape index: {}]   ;;  %s184_s6 = inlined_call_operand.vmem [shape: f32[8,128], index: 6, kind: output, shape index: {}]  }
   0x1   :  { %s31_s22 = sshll.u32 %s121_s21, 4  ;;  %s32_s22 = int_to_ptr.vmem [resolvable:$true] %s31_s22 }
   0x2   :  { %s107_s23 = scalar_lea.vmem %s32_s22, 128  ;;  %p112_p1 = scmp.lt.s32.totalorder %s32_s22, %s32_s22 }
   0x3   :  { %p108_p0 = scmp.ne.s32.totalorder %s32_s22, %s107_s23  ;;  %p113_p2 = scmp.lt.s32.totalorder %s107_s23, %s107_s23 }
   0x5   :  { %p114_p3 = por %p113_p2, %p112_p1 }
   0x7   :  { %p115_p4 = pnand %p114_p3, %p108_p0 }
   0x9   :  { %118 = shalt.err (!%p115_p4)
}
   0xa   :  { %34 = dma.hbm_to_vmem [thread:$0]  %s183_s5, 128, %s32_s22, [#allocation6]  }
   0xb   :  { %119 = dma.done.wait [#allocation6], 128  }
   0xc   :  { %120 = vsyncadd [#allocation6], 4294967168  ;;  %v41_v0 = vld [vmem:[%s181_s3] sm:$0xff]  ;;  %v45_v5 = vlaneseq  ;;  %s93_s30 = sadd.f32 -1.0, %s178_s0  ;;  %v53_v15 = vstv %s179_s1  ;;  %v56_v16 = vstv %s180_s2 }
   0xd   :  { %v68_v1 = vand.u32 2147483647, %v41_v0  ;;  %v42_v10 = vld [vmem:[%s182_s4] sm:$0xff]  ;;  %v66_v12 = vsub.f32 0.0, %v41_v0 }
   0xe   :  { %v46_v7 = vshrl.u32 %v45_v5, 7  ;;  %v48_v8 = vand.u32 127, %v45_v5  ;;  %v63_v11 = vstv %s93_s30  ;;  %v43_v14 = vld [vmem:[#allocation5] sm:$0xff]  ;;  %v60_v18 = vsub.f32 1.0, %v42_v10 }
   0xf   :  { %v69_v2 = vsub.f32 0.0, %v68_v1  ;;  %v64_v17 = vmul.f32 %v63_v11, %v42_v10  ;;  %v67_v19 = vmax.f32 %v66_v12, 0.0  ;;  %vm55_vm0 = vcmp.eq.f32.partialorder %v43_v14, %v53_v15 }
  0x10   :  { %v49_v9 = vmul.u32 128, %v46_v7  ;;  %vm54_vm2 = vcmp.lt.f32.partialorder %v43_v14, %v53_v15  ;;  %v61_v23 = vmul.f32 %v60_v18, %v41_v0  ;;  %vm85_vm5 = vcmp.eq.s32.totalorder %v46_v7, 0 }
  0x11   :  { %v70_v3 = vmul.f32 1.442695, %v69_v2  ;;  %v65_v21 = vadd.f32 1.0, %v64_v17 }
  0x12   :  { %v52_v13 = vadd.s32 %v49_v9, %v48_v8 }
  0x13   :  { %95 = vpow2.f32 %v70_v3 }
  0x14   :  { %vm57_vm1 = vcmp.lt.s32.totalorder %v52_v13, %v56_v16 }
  0x15   :  { %vm58_vm3 = vmand %vm55_vm0, %vm57_vm1 }
  0x16   :  { %vm59_vm4 = vmor %vm54_vm2, %vm58_vm3 }
  0x20   :  { %v96_v4 = vpop.eup %95 }
  0x21   :  { %v72_v6 = vadd.f32 1.0, %v96_v4 }
  0x23   :  { %97 = vlog2.f32 %v72_v6 }
  0x30   :  { %v98_v20 = vpop.eup %97 }
  0x31   :  { %v74_v22 = vmul.f32 0.6931472, %v98_v20 }
  0x33   :  { %v75_v24 = vadd.f32 %v74_v22, %v67_v19 }
  0x35   :  { %v76_v25 = vmul.f32 %v75_v24, %v65_v21 }
  0x37   :  { %v77_v26 = vadd.f32 %v76_v25, %v61_v23 }
  0x39   :  { %v78_v27 = vsel %vm59_vm4, %v77_v26, 0.0 }
  0x3a   :  { %v79_v28 = vrot.slane %v78_v27, 4 }
  0x3c   :  { %v80_v29 = vadd.f32 %v79_v28, %v78_v27 }
  0x3e   :  { %v81_v30 = vrot.slane %v80_v29, 2 }
  0x40   :  { %v82_v31 = vadd.f32 %v81_v30, %v80_v29 }
  0x42   :  { %v83_v32 = vrot.slane %v82_v31, 1 }
  0x44   :  { %v84_v33 = vadd.f32 %v83_v32, %v82_v31 }
  0x46   :  { %v86_v34 = vsel %vm85_vm5, %v84_v33, 0.0 }
  0x47   :  { %87 = vst [vmem:[%s184_s6] sm:$0xff] %v86_v34 }
  0x48   :  { %92 = vsyncpa [#allocation6], 1 }

</bundles_post_ra>
